<compile_context>
chip_gen: v7x
topology: tpu7x:2x2x1
jax: 0.10.0
libtpu: 0.0.40
codegen_flags: <defaults>
</compile_context>

<pallas_src>
import functools
import math

import jax
import jax.numpy as jnp
from jax.experimental import pallas as pl
from jax.experimental.pallas import tpu as pltpu


_MAX_TILE_N = 512                       # index rows per grid step (upper bound)
_VMEM_BUDGET = 48 * 1024 * 1024         # bytes; conservative vs v7x 64 MiB VMEM


def _round_up(x, m):
    return m * pl.cdiv(x, m)


def _sublane_align(dtype):
    # f32 -> 8, bf16 -> 16, int8/fp8 -> 32 (packed sublane layout).
    return max(8, 32 // jnp.dtype(dtype).itemsize)


def _fused_onehot_gather_kernel(sr_ids_ref, tg_ids_ref,     # (tile_n, 1) int32 blocks
                                sr_tab_ref, tg_tab_ref,     # full tables (VMEM resident)
                                out_sr_ref, out_tg_ref,     # (tile_n, dim) output tiles
                                *, tile_n, num_sr, num_tg, n_sr, n_tg):
    base = pl.program_id(0) * tile_n

    def gather(ids_ref, tab_ref, out_ref, num_rows, n_valid):
        @pl.when(base < n_valid)          # skip steps past the shorter id list
        def _():
            ids = ids_ref[...]            # (tile_n, 1) int32
            iota = jax.lax.broadcasted_iota(jnp.int32, (tile_n, num_rows), 1)
            one_hot = (iota == ids).astype(tab_ref.dtype)
            out = jnp.dot(one_hot, tab_ref[...],
                          preferred_element_type=jnp.float32)
            out_ref[...] = out.astype(out_ref.dtype)

    gather(sr_ids_ref, sr_tab_ref, out_sr_ref, num_sr, n_sr)
    gather(tg_ids_ref, tg_tab_ref, out_tg_ref, num_tg, n_tg)


def double_embedding_lookup(table_sr, table_tg, sr_ids, tg_ids, *,
                            max_tile_n=_MAX_TILE_N, core_parallel=False):
    """Fused Pallas equivalent of (embedding_sr(sr_ids), embedding_tg(tg_ids))."""
    num_sr, dim = table_sr.shape
    num_tg, dim_tg = table_tg.shape
    assert dim == dim_tg, "both embeddings must share embedding_dim"

    sr_shape, tg_shape = sr_ids.shape, tg_ids.shape
    sr_flat = jnp.ravel(sr_ids).astype(jnp.int32)
    tg_flat = jnp.ravel(tg_ids).astype(jnp.int32)
    n_sr, n_tg = sr_flat.shape[0], tg_flat.shape[0]
    n_max = max(n_sr, n_tg, 1)

    align = max(_sublane_align(table_sr.dtype), _sublane_align(table_tg.dtype))
    if n_max <= max_tile_n:
        tile_n = int(_round_up(n_max, align))        # single grid step
    else:
        tile_n = int(_round_up(max_tile_n, align))
    n_pad = int(_round_up(n_max, tile_n))
    num_tiles = n_pad // tile_n

    # Pad both id vectors to the common tile-aligned length (pad rows sliced off)
    # and give them a lane dim so they arrive as tiled VMEM blocks (not SMEM).
    sr_pad = jnp.pad(sr_flat, (0, n_pad - n_sr)).reshape(n_pad, 1)
    tg_pad = jnp.pad(tg_flat, (0, n_pad - n_tg)).reshape(n_pad, 1)

    # VMEM accounting: every operand is double-buffered by default.
    isz = lambda a: jnp.dtype(a.dtype).itemsize
    table_bytes = table_sr.size * isz(table_sr) + table_tg.size * isz(table_tg)
    out_block_bytes = tile_n * dim * (isz(table_sr) + isz(table_tg))
    id_block_bytes = 2 * tile_n * 4
    vmem_needed = 2 * (table_bytes + out_block_bytes + id_block_bytes)
    if vmem_needed > _VMEM_BUDGET:
        # TODO(synk): streamed per-tile DMA-gather fallback for vocabularies too
        # large to keep VMEM-resident (one-hot per K-chunk, accumulate over chunks).
        raise NotImplementedError("embedding tables too large for VMEM-resident path")
    vmem_limit = int(min(_VMEM_BUDGET, max(2 * vmem_needed, 8 * 1024 * 1024)))

    grid_axis = pltpu.CORE_PARALLEL if core_parallel else pltpu.PARALLEL

    grid_spec = pltpu.PrefetchScalarGridSpec(
        num_scalar_prefetch=0,
        grid=(num_tiles,),
        in_specs=[
            pl.BlockSpec((tile_n, 1), lambda i: (i, 0)),      # sr ids block
            pl.BlockSpec((tile_n, 1), lambda i: (i, 0)),      # tg ids block
            # Full tables, constant block index -> stay resident in VMEM.
            pl.BlockSpec((num_sr, dim), lambda i: (0, 0)),
            pl.BlockSpec((num_tg, dim), lambda i: (0, 0)),
        ],
        out_specs=[
            pl.BlockSpec((tile_n, dim), lambda i: (i, 0)),
            pl.BlockSpec((tile_n, dim), lambda i: (i, 0)),
        ],
    )

    out_sr, out_tg = pl.pallas_call(
        functools.partial(_fused_onehot_gather_kernel, tile_n=tile_n,
                          num_sr=num_sr, num_tg=num_tg, n_sr=n_sr, n_tg=n_tg),
        grid_spec=grid_spec,
        out_shape=(jax.ShapeDtypeStruct((n_pad, dim), table_sr.dtype),
                   jax.ShapeDtypeStruct((n_pad, dim), table_tg.dtype)),
        compiler_params=pltpu.CompilerParams(
            dimension_semantics=(grid_axis,),
            vmem_limit_bytes=vmem_limit,
        ),
    )(sr_pad, tg_pad, table_sr, table_tg)

    # Avoid extra XLA copies when no padding / reshape is actually needed.
    if n_pad != n_sr:
        out_sr = out_sr[:n_sr]
    if sr_shape != (n_sr,):
        out_sr = out_sr.reshape(sr_shape + (dim,))
    if n_pad != n_tg:
        out_tg = out_tg[:n_tg]
    if tg_shape != (n_tg,):
        out_tg = out_tg.reshape(tg_shape + (dim,))
    return out_sr, out_tg


def _xavier_uniform(key, shape, dtype=jnp.float32):
    # torch xavier_uniform_ on (rows, cols): fan_in=cols, fan_out=rows.
    fan_out, fan_in = shape
    bound = math.sqrt(6.0 / (fan_in + fan_out))
    return jax.random.uniform(key, shape, dtype, minval=-bound, maxval=bound)


class DoubleEmbedding:
    def __init__(self, num_sr, num_tg, embedding_dim, init_type="xavier", key=None):
        if key is None:
            key = jax.random.PRNGKey(0)
        k_sr, k_tg = jax.random.split(key)
        if init_type == "xavier":
            self.weight_sr = _xavier_uniform(k_sr, (num_sr, embedding_dim))
            self.weight_tg = _xavier_uniform(k_tg, (num_tg, embedding_dim))
        elif init_type == "normal":
            self.weight_sr = (1.0 / math.sqrt(num_sr)) * jax.random.normal(
                k_sr, (num_sr, embedding_dim), jnp.float32)
            self.weight_tg = (1.0 / math.sqrt(num_tg)) * jax.random.normal(
                k_tg, (num_tg, embedding_dim), jnp.float32)
        else:
            raise NotImplementedError

    def normalize(self):
        # Plain-JAX parameter update (parity with the torch module's normalize()).
        self.weight_sr = self.weight_sr / jnp.linalg.norm(
            self.weight_sr, axis=-1, keepdims=True)
        self.weight_tg = self.weight_tg / jnp.linalg.norm(
            self.weight_tg, axis=-1, keepdims=True)

    def __call__(self, sr_data, tg_data):
        return double_embedding_lookup(self.weight_sr, self.weight_tg,
                                       sr_data, tg_data)

    @property
    def weight(self):
        return (self.weight_sr, self.weight_tg)


if __name__ == "__main__":
    num_sr, num_tg, dim, seq = 64, 48, 128, 8

    key = jax.random.PRNGKey(0)
    k_mod, k1, k2, k3, k4 = jax.random.split(key, 5)

    model = DoubleEmbedding(num_sr, num_tg, dim, init_type="xavier", key=k_mod)

    # --- main forward (matches torch module: two 1-D id tensors) -------------
    sr_data = jax.random.randint(k1, (seq,), 0, num_sr, dtype=jnp.int32)
    tg_data = jax.random.randint(k2, (seq,), 0, num_tg, dtype=jnp.int32)

    out_sr, out_tg = model(sr_data, tg_data)
    out_sr = jax.block_until_ready(out_sr)
    out_tg = jax.block_until_ready(out_tg)

    ref_sr = jnp.take(model.weight_sr, sr_data, axis=0)
    ref_tg = jnp.take(model.weight_tg, tg_data, axis=0)
    assert out_sr.shape == (seq, dim) and out_tg.shape == (seq, dim)
    assert jnp.allclose(out_sr, ref_sr) and jnp.allclose(out_tg, ref_tg)

    # --- asymmetric lengths, 2-D ids, multi-tile grid (forces pl.when path) --
    sr2 = jax.random.randint(k3, (4, 5), 0, num_sr, dtype=jnp.int32)   # 20 ids
    tg2 = jax.random.randint(k4, (13,), 0, num_tg, dtype=jnp.int32)    # 13 ids
    o_sr2, o_tg2 = double_embedding_lookup(model.weight_sr, model.weight_tg,
                                           sr2, tg2, max_tile_n=8)
    o_sr2 = jax.block_until_ready(o_sr2)
    o_tg2 = jax.block_until_ready(o_tg2)
    assert o_sr2.shape == (4, 5, dim) and o_tg2.shape == (13, dim)
    assert jnp.allclose(o_sr2, jnp.take(model.weight_sr, sr2, axis=0))
    assert jnp.allclose(o_tg2, jnp.take(model.weight_tg, tg2, axis=0))

    print("KERNEL_OK")
</pallas_src>

<mosaic_0001>
module attributes {stable_mosaic.version = 11 : i64} {
  func.func @_fused_onehot_gather_kernel(%arg0: i32, %arg1: memref<8x1xi32, #tpu.memory_space<vmem>>, %arg2: memref<8x1xi32, #tpu.memory_space<vmem>>, %arg3: memref<64x128xf32, #tpu.memory_space<vmem>>, %arg4: memref<48x128xf32, #tpu.memory_space<vmem>>, %arg5: memref<8x128xf32, #tpu.memory_space<vmem>>, %arg6: memref<8x128xf32, #tpu.memory_space<vmem>>) attributes {dimension_semantics = [#tpu.dimension_semantics<parallel>], iteration_bounds = array<i64: 1>, scalar_prefetch = 0 : i64, scratch_operands = 0 : i64, tpu.core_type = #tpu.core_type<tc>, window_params = [{transform_indices = @transform_0, window_bounds = array<i64: 8, 1>}, {transform_indices = @transform_1, window_bounds = array<i64: 8, 1>}, {pipeline_mode = #tpu.pipeline_mode<synchronous>, transform_indices = @transform_2, window_bounds = array<i64: 64, 128>}, {pipeline_mode = #tpu.pipeline_mode<synchronous>, transform_indices = @transform_3, window_bounds = array<i64: 48, 128>}, {transform_indices = @transform_4, window_bounds = array<i64: 8, 128>}, {transform_indices = @transform_5, window_bounds = array<i64: 8, 128>}]} {
    %c8_i32 = arith.constant 8 : i32
    %0 = arith.muli %arg0, %c8_i32 : i32
    %c8_i32_0 = arith.constant 8 : i32
    %1 = arith.cmpi slt, %0, %c8_i32_0 : i32
    %2 = arith.extui %1 : i1 to i32
    %c0_i32 = arith.constant 0 : i32
    %3 = arith.cmpi ne, %2, %c0_i32 : i32
    scf.if %3 {
      %c0 = arith.constant 0 : index
      %c0_3 = arith.constant 0 : index
      %7 = vector.load %arg1[%c0, %c0_3] : memref<8x1xi32, #tpu.memory_space<vmem>>, vector<8x1xi32>
      %8 = tpu.iota {dimensions = array<i32: 1>} : vector<8x64xi32>
      %9 = vector.broadcast %7 : vector<8x1xi32> to vector<8x64xi32>
      %10 = arith.cmpi eq, %8, %9 : vector<8x64xi32>
      %11 = arith.extui %10 : vector<8x64xi1> to vector<8x64xi32>
      %12 = arith.sitofp %11 : vector<8x64xi32> to vector<8x64xf32>
      %c0_4 = arith.constant 0 : index
      %c0_5 = arith.constant 0 : index
      %13 = vector.load %arg3[%c0_4, %c0_5] : memref<64x128xf32, #tpu.memory_space<vmem>>, vector<64x128xf32>
      %cst = arith.constant dense<0.000000e+00> : vector<8x128xf32>
      %14 = tpu.matmul %12, %13, %cst {dimension_numbers = #tpu.dot_dimension_numbers<[1], [0], [0], [1], [0, 0, 1, 1], [], []>} : vector<8x64xf32>, vector<64x128xf32>, vector<8x128xf32> -> vector<8x128xf32>
      %c0_6 = arith.constant 0 : index
      %c0_7 = arith.constant 0 : index
      %15 = vector.load %arg5[%c0_6, %c0_7] : memref<8x128xf32, #tpu.memory_space<vmem>>, vector<8x128xf32>
      tpu.vector_store %arg5[%c0_6, %c0_7], %14 {strides = array<i32>} : memref<8x128xf32, #tpu.memory_space<vmem>>, vector<8x128xf32>,
    } else {
    }
    %c8_i32_1 = arith.constant 8 : i32
    %4 = arith.cmpi slt, %0, %c8_i32_1 : i32
    %5 = arith.extui %4 : i1 to i32
    %c0_i32_2 = arith.constant 0 : i32
    %6 = arith.cmpi ne, %5, %c0_i32_2 : i32
    scf.if %6 {
      %c0 = arith.constant 0 : index
      %c0_3 = arith.constant 0 : index
      %7 = vector.load %arg2[%c0, %c0_3] : memref<8x1xi32, #tpu.memory_space<vmem>>, vector<8x1xi32>
      %8 = tpu.iota {dimensions = array<i32: 1>} : vector<8x48xi32>
      %9 = vector.broadcast %7 : vector<8x1xi32> to vector<8x48xi32>
      %10 = arith.cmpi eq, %8, %9 : vector<8x48xi32>
      %11 = arith.extui %10 : vector<8x48xi1> to vector<8x48xi32>
      %12 = arith.sitofp %11 : vector<8x48xi32> to vector<8x48xf32>
      %c0_4 = arith.constant 0 : index
      %c0_5 = arith.constant 0 : index
      %13 = vector.load %arg4[%c0_4, %c0_5] : memref<48x128xf32, #tpu.memory_space<vmem>>, vector<48x128xf32>
      %cst = arith.constant dense<0.000000e+00> : vector<8x128xf32>
      %14 = tpu.matmul %12, %13, %cst {dimension_numbers = #tpu.dot_dimension_numbers<[1], [0], [0], [1], [0, 0, 1, 1], [], []>} : vector<8x48xf32>, vector<48x128xf32>, vector<8x128xf32> -> vector<8x128xf32>
      %c0_6 = arith.constant 0 : index
      %c0_7 = arith.constant 0 : index
      %15 = vector.load %arg6[%c0_6, %c0_7] : memref<8x128xf32, #tpu.memory_space<vmem>>, vector<8x128xf32>
      tpu.vector_store %arg6[%c0_6, %c0_7], %14 {strides = array<i32>} : memref<8x128xf32, #tpu.memory_space<vmem>>, vector<8x128xf32>,
    } else {
    }
    return
  }
  func.func @transform_0(%arg0: i32) -> (i32, i32) {
    %c0_i32 = arith.constant 0 : i32
    %c0_i32_0 = arith.constant 0 : i32
    return %arg0, %c0_i32 : i32, i32
  }
  func.func @transform_1(%arg0: i32) -> (i32, i32) {
    %c0_i32 = arith.constant 0 : i32
    %c0_i32_0 = arith.constant 0 : i32
    return %arg0, %c0_i32 : i32, i32
  }
  func.func @transform_2(%arg0: i32) -> (i32, i32) {
    %c0_i32 = arith.constant 0 : i32
    %c0_i32_0 = arith.constant 0 : i32
    %c0_i32_1 = arith.constant 0 : i32
    return %c0_i32, %c0_i32_0 : i32, i32
  }
  func.func @transform_3(%arg0: i32) -> (i32, i32) {
    %c0_i32 = arith.constant 0 : i32
    %c0_i32_0 = arith.constant 0 : i32
    %c0_i32_1 = arith.constant 0 : i32
    return %c0_i32, %c0_i32_0 : i32, i32
  }
  func.func @transform_4(%arg0: i32) -> (i32, i32) {
    %c0_i32 = arith.constant 0 : i32
    %c0_i32_0 = arith.constant 0 : i32
    return %arg0, %c0_i32 : i32, i32
  }
  func.func @transform_5(%arg0: i32) -> (i32, i32) {
    %c0_i32 = arith.constant 0 : i32
    %c0_i32_0 = arith.constant 0 : i32
    return %arg0, %c0_i32 : i32, i32
  }
}

</mosaic_0001>

<bundles_post_ra>
// kernel: tpu_custom_call.1
= control target key start
LH: loop header
LB: loop body
LE: loop exit
PB: predicated region body
PF: predicated region fallthrough
CT: control target
= control target key end

     0   :  { %11 = vsyncpa [#allocation3], 0  ;;  %s540_s0 = inlined_call_operand.vmem [shape: s32[8,1], index: 0, kind: input, shape index: {}]   ;;  %s541_s1 = inlined_call_operand.vmem [shape: s32[8,1], index: 1, kind: input, shape index: {}]   ;;  %s542_s2 = inlined_call_operand.hbm [shape: f32[64,128], index: 2, kind: input, shape index: {}]   ;;  %s543_s3 = inlined_call_operand.hbm [shape: f32[48,128], index: 3, kind: input, shape index: {}]   ;;  %s544_s4 = inlined_call_operand.hbm [shape: f32[8,128], index: 4, kind: output, shape index: {0}]   ;;  %s545_s5 = inlined_call_operand.hbm [shape: f32[8,128], index: 5, kind: output, shape index: {1}]  }
   0x1   :  { %12 = vsyncpa [#allocation6], 0 }
   0x2   :  { %13 = vsyncpa [#allocation4], 0 }
   0x3   :  { %14 = vsyncpa [#allocation9], 0  ;;  %s446_s18 = smov [#allocation2]   ;;  %s350_s22 = scalar_lea.hbm %s542_s2, 1024 }
   0x4   :  { %s24_s19 = sshll.u32 %s446_s18, 4  ;;  %p351_p0 = scmp.ne.s32.totalorder %s542_s2, %s350_s22  ;;  %s25_s19 = int_to_ptr.vmem [resolvable:$true] %s24_s19 }
   0x5   :  { %p354_p1 = scmp.lt.u32.totalorder %s350_s22, %s542_s2 }
   0x7   :  { %p356_p2 = pnand %p354_p1, %p351_p0 }
   0x9   :  { %359 = shalt.err (!%p356_p2)
}
   0xa   :  { %s360_s27 = scalar_lea.vmem %s25_s19, 1024  ;;  %p365_p4 = scmp.lt.s32.totalorder %s25_s19, %s25_s19 }
   0xb   :  { %p361_p3 = scmp.ne.s32.totalorder %s25_s19, %s360_s27  ;;  %p366_p5 = scmp.lt.s32.totalorder %s360_s27, %s360_s27 }
   0xd   :  { %p367_p6 = por %p366_p5, %p365_p4 }
   0xf   :  { %p368_p7 = pnand %p367_p6, %p361_p3 }
  0x11   :  { %371 = shalt.err (!%p368_p7)
}
  0x12   :  { %s447_s28 = smov 128   ;;  %s448_s29 = smov 8  }
  0x13   :  { %30 = dma.hbm_to_vmem [thread:$0]  %s542_s2, 1024, %s25_s19, [#allocation3], %s447_s28, %s447_s28, %s448_s29  }
  0x14   :  { %s449_s7 = smov [#allocation5]   ;;  %s372_s11 = scalar_lea.hbm %s543_s3, 768 }
  0x15   :  { %s36_s8 = sshll.u32 %s449_s7, 4  ;;  %p373_p8 = scmp.ne.s32.totalorder %s543_s3, %s372_s11  ;;  %s37_s8 = int_to_ptr.vmem [resolvable:$true] %s36_s8 }
  0x16   :  { %p376_p9 = scmp.lt.u32.totalorder %s372_s11, %s543_s3 }
  0x18   :  { %p378_p10 = pnand %p376_p9, %p373_p8 }
  0x1a   :  { %381 = shalt.err (!%p378_p10)
}
  0x1b   :  { %s382_s16 = scalar_lea.vmem %s37_s8, 768  ;;  %p387_p12 = scmp.lt.s32.totalorder %s37_s8, %s37_s8 }
  0x1c   :  { %p383_p11 = scmp.ne.s32.totalorder %s37_s8, %s382_s16  ;;  %p388_p13 = scmp.lt.s32.totalorder %s382_s16, %s382_s16 }
  0x1e   :  { %p389_p0 = por %p388_p13, %p387_p12 }
  0x20   :  { %p390_p1 = pnand %p389_p0, %p383_p11 }
  0x22   :  { %393 = shalt.err (!%p390_p1)
}
  0x23   :  { %42 = dma.hbm_to_vmem [thread:$0]  %s543_s3, 768, %s37_s8, [#allocation6], %s447_s28, %s447_s28, %s448_s29  }
  0x24   :  { %438 = dma.done.wait [#allocation3], 1024  }
  0x25   :  { %439 = vsyncadd [#allocation3], 4294966272 }
  0x26   :  { %440 = dma.done.wait [#allocation6], 768  }
  0x27   :  { %441 = vsyncadd [#allocation6], 4294966528  ;;  %v450_v0 = vmov 0   ;;  %v451_v1 = vmov 0.0|0.0   ;;  %v54_v2 = vld [vmem:[%s540_s0] sm:$0xff]  ;;  %v63_v3 = vld [vmem:[#allocation2] sm:$0xff]  ;;  %v55_v26 = vlaneseq }
  0x28   :  { %349 = vset.pattern.permute.xlu0 %v450_v0  ;;  %318 = vmatprep.subr.bf16.mxu0 %v451_v1  ;;  %v64_v4 = vld [vmem:[#allocation2 + $0x8] sm:$0xff]  ;;  %v65_v5 = vld [vmem:[#allocation2 + $0x10] sm:$0xff]  ;;  %v66_v6 = vld [vmem:[#allocation2 + $0x18] sm:$0xff]  ;;  %vm452_vm0 = vmmov 0   ;;  %v453_v10 = vmov 0.0   ;;  %vm71_vm1 = vcmask 523264  }
  0x29   :  { %330 = vmatprep.subr.bf16.mxu1 %v451_v1  ;;  %58 = vperm.xlu0 %349, %v54_v2   ;;  %v146_v7 = vld [vmem:[%s541_s1] sm:$0xff]  ;;  %v319_v8 = vpack.c.bf16 %v64_v4, %v63_v3  ;;  %v153_v9 = vld [vmem:[#allocation5] sm:$0xff]  ;;  %v154_v11 = vld [vmem:[#allocation5 + $0x8] sm:$0xff]  ;;  %v322_v12 = vpack.c.bf16 %v66_v6, %v65_v5  ;;  %v56_v27 = vand.u32 127, %v55_v26  ;;  %vm159_vm3 = vcmask 392192   ;;  %s454_s0 = smov [#allocation7]  }
  0x2a   :  { %300 = vmatprep.mubr.msk.f32.mxu0 %vm452_vm0, %v453_v10  ;;  %315 = vmatprep.mubr.msk.f32.mxu1 %vm452_vm0, %v453_v10  ;;  %v331_v13 = vpack.c.bf16 %v154_v11, %v153_v9  ;;  %v155_v14 = vld [vmem:[#allocation5 + $0x10] sm:$0xff]  ;;  %v156_v15 = vld [vmem:[#allocation5 + $0x18] sm:$0xff]  ;;  %v67_v16 = vld [vmem:[#allocation2 + $0x20] sm:$0xff]  ;;  %s240_s1 = sshll.u32 %s454_s0, 4  ;;  %s455_s21 = smov [#allocation8]   ;;  %s241_s1 = int_to_ptr.vmem [resolvable:$true] %s240_s1 }
  0x2b   :  { %320 = vmatpush3.bf16.msra.mxu0 %v319_v8  ;;  %v68_v17 = vld [vmem:[#allocation2 + $0x28] sm:$0xff]  ;;  %v334_v18 = vpack.c.bf16 %v156_v15, %v155_v14  ;;  %v157_v19 = vld [vmem:[#allocation5 + $0x20] sm:$0xff]  ;;  %v69_v22 = vld [vmem:[#allocation2 + $0x30] sm:$0xff]  ;;  %s250_s22 = sshll.u32 %s455_s21, 4  ;;  %s394_s23 = scalar_lea.vmem %s241_s1, 128  ;;  %s251_s22 = int_to_ptr.vmem [resolvable:$true] %s250_s22 }
  0x2c   :  { %321 = vmatprep.subr.bf16.mxu0 %v451_v1  ;;  %332 = vmatpush3.bf16.msra.mxu1 %v331_v13  ;;  %v158_v20 = vld [vmem:[#allocation5 + $0x28] sm:$0xff]  ;;  %v325_v21 = vpack.c.bf16 %v68_v17, %v67_v16  ;;  %v70_v23 = vld [vmem:[#allocation2 + $0x38] sm:$0xff]  ;;  %p395_p2 = scmp.ne.s32.totalorder %s241_s1, %s394_s23  ;;  %p399_p3 = scmp.lt.s32.totalorder %s241_s1, %s241_s1 }
  0x2d   :  { %148 = vperm.xlu0 %349, %v146_v7   ;;  %333 = vmatprep.subr.bf16.mxu1 %v451_v1  ;;  %v337_v24 = vpack.c.bf16 %v158_v20, %v157_v19  ;;  %v328_v25 = vpack.c.bf16 %v70_v23, %v69_v22  ;;  %p400_p4 = scmp.lt.s32.totalorder %s394_s23, %s394_s23 }
  0x2f   :  { %323 = vmatpush3.bf16.msra.mxu0 %v322_v12  ;;  %p401_p5 = por %p400_p4, %p399_p3 }
  0x30   :  { %324 = vmatprep.subr.bf16.mxu0 %v451_v1  ;;  %335 = vmatpush3.bf16.msra.mxu1 %v334_v18 }
  0x31   :  { %336 = vmatprep.subr.bf16.mxu1 %v451_v1  ;;  %p402_p6 = pnand %p401_p5, %p395_p2 }
  0x33   :  { %326 = vmatpush3.bf16.msra.mxu0 %v325_v21 }
  0x34   :  { %327 = vmatprep.subr.bf16.mxu0 %v451_v1  ;;  %338 = vmatpush3.bf16.msra.mxu1 %v337_v24 }
  0x37   :  { %329 = vmatpush3.bf16.msra.mxu0 %v328_v25 }
  0xa8   :  { %v59_v28 = vpop.permute.xlu0 %58 }
  0xa9   :  { %vm60_vm2 = vcmp.eq.s32.totalorder %v56_v27, %v59_v28 }
  0xaa   :  { %v264_v29 = vsel %vm60_vm2, 1.0, %v453_v10 }
  0xab   :  { %301 = vmatmul.mubr.msk.f32.vlgmr.msra.gmra.mrb[0].mxu0 %vm71_vm1, %v264_v29 }
  0xac   :  { %v149_v30 = vpop.permute.xlu0 %148 }
  0xad   :  { %vm150_vm4 = vcmp.eq.s32.totalorder %v56_v27, %v149_v30 }
  0xae   :  { %v266_v31 = vsel %vm150_vm4, 1.0, %v453_v10 }
  0xaf   :  { %316 = vmatmul.mubr.msk.f32.vlgmr.msra.gmra.mrb[0].mxu1 %vm159_vm3, %v266_v31 }
 0x17e   :  { %v141_v32 = vpop.f32.mrb[0].mxu0 }
 0x17f   :  { %145 = vst [vmem:[#allocation7] sm:$0xff] %v141_v32  ;;  %v302_v33 = vpop.f32.mrb[1].mxu0 }
 0x180   :  { %405 = shalt.err (!%p402_p6)
}
 0x181   :  { %s406_s26 = scalar_lea.hbm %s544_s4, 128 }
 0x182   :  { %p407_p7 = scmp.ne.s32.totalorder %s544_s4, %s406_s26  ;;  %p410_p8 = scmp.lt.u32.totalorder %s406_s26, %s544_s4 }
 0x184   :  { %p412_p9 = pnand %p410_p8, %p407_p7 }
 0x186   :  { %415 = shalt.err (!%p412_p9)
}
 0x187   :  { %243 = dma.vmem_to_hbm [thread:$0]  %s241_s1, 128, %s544_s4, [#allocation4]   ;;  %v229_v34 = vpop.f32.mrb[0].mxu1 }
 0x188   :  { %233 = vst [vmem:[#allocation8] sm:$0xff] %v229_v34  ;;  %v317_v35 = vpop.f32.mrb[1].mxu1  ;;  %s416_s8 = scalar_lea.vmem %s251_s22, 128  ;;  %p421_p11 = scmp.lt.s32.totalorder %s251_s22, %s251_s22 }
 0x189   :  { %p417_p10 = scmp.ne.s32.totalorder %s251_s22, %s416_s8  ;;  %p422_p12 = scmp.lt.s32.totalorder %s416_s8, %s416_s8 }
 0x18b   :  { %p423_p13 = por %p422_p12, %p421_p11 }
 0x18d   :  { %p424_p0 = pnand %p423_p13, %p417_p10 }
 0x18f   :  { %427 = shalt.err (!%p424_p0)
}
 0x190   :  { %s428_s11 = scalar_lea.hbm %s545_s5, 128 }
 0x191   :  { %p429_p1 = scmp.ne.s32.totalorder %s545_s5, %s428_s11  ;;  %p432_p2 = scmp.lt.u32.totalorder %s428_s11, %s545_s5 }
 0x193   :  { %p434_p3 = pnand %p432_p2, %p429_p1 }
 0x195   :  { %437 = shalt.err (!%p434_p3)
}
 0x196   :  { %253 = dma.vmem_to_hbm [thread:$0]  %s251_s22, 128, %s545_s5, [#allocation9]  }
 0x197   :  { %442 = dma.done.wait [#allocation4], 128  }
 0x198   :  { %443 = vsyncadd [#allocation4], 4294967168 }
 0x199   :  { %444 = dma.done.wait [#allocation9], 128  }
 0x19a   :  { %445 = vsyncadd [#allocation9], 4294967168 }
 0x19b   :  { %260 = vsyncpa [#allocation3], 1 }
 0x19c   :  { %261 = vsyncpa [#allocation6], 1 }
 0x19d   :  { %262 = vsyncpa [#allocation4], 1 }
 0x19e   :  { %263 = vsyncpa [#allocation9], 1 }

</bundles_post_ra>
